<compile_context>
chip_gen: v6e
topology: v6e:2x2x1
jax: 0.10.0
libtpu: 0.0.40
codegen_flags: <defaults>
</compile_context>

<pallas_src>
import jax
import jax.numpy as jnp
from jax.experimental import pallas as pl
from jax.experimental.pallas import tpu as pltpu


# ----------------------------------------------------------------- kernels

def _conv1x1_bn_relu_kernel(x_ref, w_ref, b_ref, o_ref):
    """x: (tm, Cin), w: (Cin, Cout) with BN scale folded, b: (1, Cout), o: (tm, Cout)."""
    y = jnp.dot(x_ref[...], w_ref[...], preferred_element_type=jnp.float32)
    y = jnp.maximum(y + b_ref[...], 0.0)
    o_ref[...] = y.astype(o_ref.dtype)


def _conv3x3_bn_relu_kernel(x_ref, w_ref, b_ref, o_ref):
    """One batch image per grid step.

    x: (H+2, W+2, Cin) zero-padded image
    w: (3, 3, Cin, Cout) with BN scale folded
    b: (1, Cout)
    o: (H, W, Cout)
    3x3 conv == 9 shifted channel matmuls accumulated in f32 registers.
    """
    H, W, Cout = o_ref.shape
    Cin = x_ref.shape[-1]
    x = x_ref[...]                                   # (H+2, W+2, Cin)
    acc = jnp.zeros((H * W, Cout), jnp.float32)
    for dh in range(3):                              # static unroll: 9 MXU matmuls
        for dw in range(3):
            patch = x[dh:dh + H, dw:dw + W, :].reshape(H * W, Cin)
            acc = acc + jnp.dot(patch, w_ref[dh, dw, :, :],
                                preferred_element_type=jnp.float32)
    y = jnp.maximum(acc + b_ref[...], 0.0)
    o_ref[...] = y.reshape(H, W, Cout).astype(o_ref.dtype)


# ----------------------------------------------------------------- wrappers

def _pick_tile(m, target):
    """Largest power-of-two-ish divisor of m that is <= target (>= 8 when possible)."""
    t = min(m, target)
    while t > 8 and m % t != 0:
        t //= 2
    if m % t != 0:
        t = m
    return t


def conv1x1_bn_relu(x_nhwc, w_io, bias, *, compute_dtype, tile_m=1024):
    N, H, W, Cin = x_nhwc.shape
    Cout = w_io.shape[1]
    M = N * H * W
    tm = _pick_tile(M, tile_m)
    xf = x_nhwc.reshape(M, Cin).astype(compute_dtype)
    wf = w_io.astype(compute_dtype)
    bf = bias.reshape(1, Cout).astype(jnp.float32)
    out = pl.pallas_call(
        _conv1x1_bn_relu_kernel,
        out_shape=jax.ShapeDtypeStruct((M, Cout), x_nhwc.dtype),
        grid_spec=pltpu.PrefetchScalarGridSpec(
            num_scalar_prefetch=0,
            grid=(M // tm,),
            in_specs=[
                pl.BlockSpec((tm, Cin), lambda i: (i, 0)),
                pl.BlockSpec((Cin, Cout), lambda i: (0, 0)),
                pl.BlockSpec((1, Cout), lambda i: (0, 0)),
            ],
            out_specs=pl.BlockSpec((tm, Cout), lambda i: (i, 0)),
        ),
        compiler_params=pltpu.CompilerParams(
            dimension_semantics=("parallel",)),
    )(xf, wf, bf)
    return out.reshape(N, H, W, Cout)


def conv3x3_bn_relu(x_nhwc, w_hwio, bias, *, compute_dtype):
    N, H, W, Cin = x_nhwc.shape
    Cout = w_hwio.shape[-1]
    xp = jnp.pad(x_nhwc, ((0, 0), (1, 1), (1, 1), (0, 0))).astype(compute_dtype)
    wf = w_hwio.astype(compute_dtype)
    bf = bias.reshape(1, Cout).astype(jnp.float32)
    out = pl.pallas_call(
        _conv3x3_bn_relu_kernel,
        out_shape=jax.ShapeDtypeStruct((N, H, W, Cout), x_nhwc.dtype),
        grid_spec=pltpu.PrefetchScalarGridSpec(
            num_scalar_prefetch=0,
            grid=(N,),
            in_specs=[
                pl.BlockSpec((None, H + 2, W + 2, Cin), lambda n: (n, 0, 0, 0)),
                pl.BlockSpec((3, 3, Cin, Cout), lambda n: (0, 0, 0, 0)),
                pl.BlockSpec((1, Cout), lambda n: (0, 0)),
            ],
            out_specs=pl.BlockSpec((None, H, W, Cout), lambda n: (n, 0, 0, 0)),
        ),
        compiler_params=pltpu.CompilerParams(
            dimension_semantics=("parallel",)),
    )(xp, wf, bf)
    return out


def fold_conv_bn(w_oihw, gamma, beta, mean, var, eps=1e-5):
    """Fold eval-mode BatchNorm into a bias-free conv. Returns HWIO weight + bias."""
    scale = gamma / jnp.sqrt(var + eps)
    bias = beta - mean * scale
    w_hwio = jnp.transpose(w_oihw, (2, 3, 1, 0)) * scale[None, None, None, :]
    return w_hwio, bias


def two_dense_block(x_nchw, params, *, compute_dtype=None):
    """params: dict layer -> (folded HWIO weight, bias). Layers: l1, l2, r1, r2, r3."""
    cd = compute_dtype if compute_dtype is not None else x_nchw.dtype
    x = jnp.transpose(x_nchw, (0, 2, 3, 1))  # NHWC

    l1_w, l1_b = params["l1"]
    l2_w, l2_b = params["l2"]
    r1_w, r1_b = params["r1"]
    r2_w, r2_b = params["r2"]
    r3_w, r3_b = params["r3"]

    left = conv1x1_bn_relu(x, l1_w[0, 0], l1_b, compute_dtype=cd)
    left = conv3x3_bn_relu(left, l2_w, l2_b, compute_dtype=cd)

    right = conv1x1_bn_relu(x, r1_w[0, 0], r1_b, compute_dtype=cd)
    right = conv3x3_bn_relu(right, r2_w, r2_b, compute_dtype=cd)
    right = conv3x3_bn_relu(right, r3_w, r3_b, compute_dtype=cd)

    cat = jnp.concatenate([x, left, right], axis=-1)
    return jnp.transpose(cat, (0, 3, 1, 2))


# ----------------------------------------------------------------- reference

def _conv_bn_relu_ref(x_nchw, w_oihw, gamma, beta, mean, var, *, pad, eps=1e-5):
    y = jax.lax.conv_general_dilated(
        x_nchw, w_oihw, window_strides=(1, 1),
        padding=[(pad, pad), (pad, pad)],
        dimension_numbers=("NCHW", "OIHW", "NCHW"),
        precision=jax.lax.Precision.HIGHEST)
    scale = gamma / jnp.sqrt(var + eps)
    bias = beta - mean * scale
    y = y * scale[None, :, None, None] + bias[None, :, None, None]
    return jnp.maximum(y, 0.0)


def _two_dense_block_ref(x, raw):
    l = _conv_bn_relu_ref(x, *raw["l1"], pad=0)
    l = _conv_bn_relu_ref(l, *raw["l2"], pad=1)
    r = _conv_bn_relu_ref(x, *raw["r1"], pad=0)
    r = _conv_bn_relu_ref(r, *raw["r2"], pad=1)
    r = _conv_bn_relu_ref(r, *raw["r3"], pad=1)
    return jnp.concatenate([x, l, r], axis=1)


# ----------------------------------------------------------------- test

if __name__ == "__main__":
    key = jax.random.PRNGKey(0)
    N, inp, H, W = 2, 8, 16, 16
    inter_channel, growth = 16, 8
    eps = 1e-5

    def make_layer(k, cin, cout, ksz):
        kw, kg, kb, km, kv = jax.random.split(k, 5)
        w = jax.random.normal(kw, (cout, cin, ksz, ksz), jnp.float32)
        w = w / jnp.sqrt(float(cin * ksz * ksz))
        gamma = 1.0 + 0.1 * jax.random.normal(kg, (cout,), jnp.float32)
        beta = 0.1 * jax.random.normal(kb, (cout,), jnp.float32)
        mean = 0.1 * jax.random.normal(km, (cout,), jnp.float32)
        var = jnp.abs(1.0 + 0.1 * jax.random.normal(kv, (cout,), jnp.float32))
        return (w, gamma, beta, mean, var)

    kx, k1, k2, k3, k4, k5 = jax.random.split(key, 6)
    x = jax.random.normal(kx, (N, inp, H, W), jnp.float32)

    raw = {
        "l1": make_layer(k1, inp, inter_channel, 1),
        "l2": make_layer(k2, inter_channel, growth, 3),
        "r1": make_layer(k3, inp, inter_channel, 1),
        "r2": make_layer(k4, inter_channel, growth, 3),
        "r3": make_layer(k5, growth, growth, 3),
    }
    params = {name: fold_conv_bn(*raw[name], eps=eps) for name in raw}

    # f32 path (tight correctness check against the pure-JAX reference).
    out = two_dense_block(x, params, compute_dtype=jnp.float32)
    out = jax.block_until_ready(out)

    ref = _two_dense_block_ref(x, raw)
    assert out.shape == (N, inp + 2 * growth, H, W), out.shape
    max_err = float(jnp.max(jnp.abs(out - ref)))
    assert jnp.allclose(out, ref, atol=1e-3, rtol=1e-3), max_err

    # bf16 MXU path (f32 accumulation) — the fast path recommended for v6e/v7x.
    out_bf16 = jax.block_until_ready(
        two_dense_block(x, params, compute_dtype=jnp.bfloat16))
    rel = float(jnp.max(jnp.abs(out_bf16 - ref)) / (jnp.max(jnp.abs(ref)) + 1e-6))
    assert bool(jnp.all(jnp.isfinite(out_bf16))) and rel < 0.1, rel

    print("KERNEL_OK")
</pallas_src>

<mosaic_0001>
module attributes {stable_mosaic.version = 11 : i64} {
  func.func @_conv1x1_bn_relu_kernel(%arg0: i32, %arg1: memref<512x8xf32, #tpu.memory_space<vmem>>, %arg2: memref<8x16xf32, #tpu.memory_space<vmem>>, %arg3: memref<1x16xf32, #tpu.memory_space<vmem>>, %arg4: memref<512x16xf32, #tpu.memory_space<vmem>>) attributes {dimension_semantics = [#tpu.dimension_semantics<parallel>], iteration_bounds = array<i64: 1>, scalar_prefetch = 0 : i64, scratch_operands = 0 : i64, tpu.core_type = #tpu.core_type<tc>, window_params = [{transform_indices = @transform_0, window_bounds = array<i64: 512, 8>}, {pipeline_mode = #tpu.pipeline_mode<synchronous>, transform_indices = @transform_1, window_bounds = array<i64: 8, 16>}, {pipeline_mode = #tpu.pipeline_mode<synchronous>, transform_indices = @transform_2, window_bounds = array<i64: 1, 16>}, {transform_indices = @transform_3, window_bounds = array<i64: 512, 16>}]} {
    %c0 = arith.constant 0 : index
    %c0_0 = arith.constant 0 : index
    %0 = vector.load %arg1[%c0, %c0_0] : memref<512x8xf32, #tpu.memory_space<vmem>>, vector<512x8xf32>
    %c0_1 = arith.constant 0 : index
    %c0_2 = arith.constant 0 : index
    %1 = vector.load %arg2[%c0_1, %c0_2] : memref<8x16xf32, #tpu.memory_space<vmem>>, vector<8x16xf32>
    %cst = arith.constant dense<0.000000e+00> : vector<512x16xf32>
    %2 = tpu.matmul %0, %1, %cst {dimension_numbers = #tpu.dot_dimension_numbers<[1], [0], [0], [1], [0, 0, 1, 1], [], []>} : vector<512x8xf32>, vector<8x16xf32>, vector<512x16xf32> -> vector<512x16xf32>
    %c0_3 = arith.constant 0 : index
    %c0_4 = arith.constant 0 : index
    %3 = vector.load %arg3[%c0_3, %c0_4] : memref<1x16xf32, #tpu.memory_space<vmem>>, vector<1x16xf32>
    %4 = vector.broadcast %3 : vector<1x16xf32> to vector<512x16xf32>
    %5 = arith.addf %2, %4 : vector<512x16xf32>
    %cst_5 = arith.constant 0.000000e+00 : f32
    %6 = vector.broadcast %cst_5 : f32 to vector<512x16xf32>
    %7 = arith.maximumf %5, %6 : vector<512x16xf32>
    %c0_6 = arith.constant 0 : index
    %c0_7 = arith.constant 0 : index
    %8 = vector.load %arg4[%c0_6, %c0_7] : memref<512x16xf32, #tpu.memory_space<vmem>>, vector<512x16xf32>
    tpu.vector_store %arg4[%c0_6, %c0_7], %7 {strides = array<i32>} : memref<512x16xf32, #tpu.memory_space<vmem>>, vector<512x16xf32>,
    return
  }
  func.func @transform_0(%arg0: i32) -> (i32, i32) {
    %c0_i32 = arith.constant 0 : i32
    %c0_i32_0 = arith.constant 0 : i32
    return %arg0, %c0_i32 : i32, i32
  }
  func.func @transform_1(%arg0: i32) -> (i32, i32) {
    %c0_i32 = arith.constant 0 : i32
    %c0_i32_0 = arith.constant 0 : i32
    %c0_i32_1 = arith.constant 0 : i32
    return %c0_i32, %c0_i32_0 : i32, i32
  }
  func.func @transform_2(%arg0: i32) -> (i32, i32) {
    %c0_i32 = arith.constant 0 : i32
    %c0_i32_0 = arith.constant 0 : i32
    %c0_i32_1 = arith.constant 0 : i32
    return %c0_i32, %c0_i32_0 : i32, i32
  }
  func.func @transform_3(%arg0: i32) -> (i32, i32) {
    %c0_i32 = arith.constant 0 : i32
    %c0_i32_0 = arith.constant 0 : i32
    return %arg0, %c0_i32 : i32, i32
  }
}

</mosaic_0001>

<bundles_post_ra>
// kernel: tpu_custom_call.1
= control target key start
LH: loop header
LB: loop body
LE: loop exit
PB: predicated region body
PF: predicated region fallthrough
CT: control target
= control target key end

     0   :  { %vm86_vm0 = vcmask 64512   ;;  %vm728_vm1 = vcmask 130048   ;;  %s1631_s1 = inlined_call_operand.vmem [shape: f32[8,16], index: 1, kind: input, shape index: {}]   ;;  %s1632_s0 = inlined_call_operand.vmem [shape: f32[512,8], index: 0, kind: input, shape index: {}]   ;;  %s1633_s2 = inlined_call_operand.vmem [shape: f32[1,16], index: 2, kind: input, shape index: {}]   ;;  %s1634_s3 = inlined_call_operand.vmem [shape: f32[512,16], index: 3, kind: output, shape index: {}]  }
   0x1   :  { %v78_v0 = vld [vmem:[%s1631_s1] sm:$0xff]  ;;  %v15_v3 = vld [vmem:[%s1632_s0 + $0x8] sm:$0xff]  ;;  %v16_v5 = vld [vmem:[%s1632_s0 + $0x10] sm:$0xff] }
   0x2   :  { %v14_v1 = vld [vmem:[%s1632_s0] sm:$0xff]  ;;  %927 = vmatprep.subr.mxu0 %v78_v0  ;;  %1025 = vmatprep.subr.mxu1 %v78_v0  ;;  %v47_v4 = vld [vmem:[%s1632_s0 + $0x108] sm:$0xff]  ;;  %v48_v6 = vld [vmem:[%s1632_s0 + $0x110] sm:$0xff] }
   0x3   :  { %v46_v2 = vld [vmem:[%s1632_s0 + $0x100] sm:$0xff]  ;;  %928 = vmatpush3.msra.mxu0 %v78_v0  ;;  %1026 = vmatpush3.msra.mxu1 %v78_v0  ;;  %v17_v7 = vld [vmem:[%s1632_s0 + $0x18] sm:$0xff]  ;;  %v19_v11 = vld [vmem:[%s1632_s0 + $0x28] sm:$0xff] }
   0x4   :  { %929 = vmatprep.mubr.msk.f32.mxu0 %vm86_vm0, %v14_v1  ;;  %977 = vmatprep.mubr.msk.f32.mxu1 %vm86_vm0, %v46_v2  ;;  %v49_v8 = vld [vmem:[%s1632_s0 + $0x118] sm:$0xff]  ;;  %v18_v9 = vld [vmem:[%s1632_s0 + $0x20] sm:$0xff]  ;;  %v51_v12 = vld [vmem:[%s1632_s0 + $0x128] sm:$0xff] }
   0x5   :  { %930 = vmatmul.mubr.msk.f32.vlgmr.msra.gmra.mxu0 %vm86_vm0, %v15_v3  ;;  %978 = vmatmul.mubr.msk.f32.vlgmr.msra.gmra.mxu1 %vm86_vm0, %v47_v4  ;;  %v50_v10 = vld [vmem:[%s1632_s0 + $0x120] sm:$0xff]  ;;  %v20_v13 = vld [vmem:[%s1632_s0 + $0x30] sm:$0xff]  ;;  %v21_v15 = vld [vmem:[%s1632_s0 + $0x38] sm:$0xff] }
   0x6   :  { %932 = vmatprep.mubr.msk.f32.mxu0 %vm86_vm0, %v16_v5  ;;  %980 = vmatprep.mubr.msk.f32.mxu1 %vm86_vm0, %v48_v6  ;;  %v52_v14 = vld [vmem:[%s1632_s0 + $0x130] sm:$0xff]  ;;  %v53_v16 = vld [vmem:[%s1632_s0 + $0x138] sm:$0xff]  ;;  %v22_v17 = vld [vmem:[%s1632_s0 + $0x40] sm:$0xff] }
   0x7   :  { %v54_v18 = vld [vmem:[%s1632_s0 + $0x140] sm:$0xff]  ;;  %v23_v19 = vld [vmem:[%s1632_s0 + $0x48] sm:$0xff]  ;;  %v24_v21 = vld [vmem:[%s1632_s0 + $0x50] sm:$0xff] }
   0x8   :  { %v55_v20 = vld [vmem:[%s1632_s0 + $0x148] sm:$0xff]  ;;  %v56_v22 = vld [vmem:[%s1632_s0 + $0x150] sm:$0xff]  ;;  %v25_v23 = vld [vmem:[%s1632_s0 + $0x58] sm:$0xff] }
   0x9   :  { %933 = vmatmul.mubr.msk.f32.gmra.mxu0 %vm86_vm0, %v17_v7  ;;  %981 = vmatmul.mubr.msk.f32.gmra.mxu1 %vm86_vm0, %v49_v8  ;;  %v57_v24 = vld [vmem:[%s1632_s0 + $0x158] sm:$0xff]  ;;  %v26_v25 = vld [vmem:[%s1632_s0 + $0x60] sm:$0xff]  ;;  %v27_v27 = vld [vmem:[%s1632_s0 + $0x68] sm:$0xff] }
   0xa   :  { %935 = vmatprep.mubr.msk.f32.mxu0 %vm86_vm0, %v18_v9  ;;  %983 = vmatprep.mubr.msk.f32.mxu1 %vm86_vm0, %v50_v10  ;;  %v58_v26 = vld [vmem:[%s1632_s0 + $0x160] sm:$0xff]  ;;  %v59_v28 = vld [vmem:[%s1632_s0 + $0x168] sm:$0xff]  ;;  %v28_v29 = vld [vmem:[%s1632_s0 + $0x70] sm:$0xff] }
   0xb   :  { %v60_v30 = vld [vmem:[%s1632_s0 + $0x170] sm:$0xff]  ;;  %v29_v31 = vld [vmem:[%s1632_s0 + $0x78] sm:$0xff]  ;;  %v30_v33 = vld [vmem:[%s1632_s0 + $0x80] sm:$0xff] }
   0xc   :  { %v61_v32 = vld [vmem:[%s1632_s0 + $0x178] sm:$0xff]  ;;  %v62_v34 = vld [vmem:[%s1632_s0 + $0x180] sm:$0xff]  ;;  %v31_v35 = vld [vmem:[%s1632_s0 + $0x88] sm:$0xff] }
   0xd   :  { %936 = vmatmul.mubr.msk.f32.gmra.mxu0 %vm86_vm0, %v19_v11  ;;  %984 = vmatmul.mubr.msk.f32.gmra.mxu1 %vm86_vm0, %v51_v12  ;;  %v63_v36 = vld [vmem:[%s1632_s0 + $0x188] sm:$0xff]  ;;  %v32_v37 = vld [vmem:[%s1632_s0 + $0x90] sm:$0xff]  ;;  %v33_v39 = vld [vmem:[%s1632_s0 + $0x98] sm:$0xff] }
   0xe   :  { %938 = vmatprep.mubr.msk.f32.mxu0 %vm86_vm0, %v20_v13  ;;  %986 = vmatprep.mubr.msk.f32.mxu1 %vm86_vm0, %v52_v14  ;;  %v64_v38 = vld [vmem:[%s1632_s0 + $0x190] sm:$0xff]  ;;  %v65_v40 = vld [vmem:[%s1632_s0 + $0x198] sm:$0xff]  ;;  %v34_v41 = vld [vmem:[%s1632_s0 + $0xa0] sm:$0xff] }
   0xf   :  { %v66_v42 = vld [vmem:[%s1632_s0 + $0x1a0] sm:$0xff]  ;;  %v35_v43 = vld [vmem:[%s1632_s0 + $0xa8] sm:$0xff]  ;;  %v36_v45 = vld [vmem:[%s1632_s0 + $0xb0] sm:$0xff] }
  0x10   :  { %v67_v44 = vld [vmem:[%s1632_s0 + $0x1a8] sm:$0xff]  ;;  %v68_v46 = vld [vmem:[%s1632_s0 + $0x1b0] sm:$0xff]  ;;  %v37_v47 = vld [vmem:[%s1632_s0 + $0xb8] sm:$0xff] }
  0x11   :  { %939 = vmatmul.mubr.msk.f32.gmra.mxu0 %vm86_vm0, %v21_v15  ;;  %987 = vmatmul.mubr.msk.f32.gmra.mxu1 %vm86_vm0, %v53_v16  ;;  %v69_v48 = vld [vmem:[%s1632_s0 + $0x1b8] sm:$0xff]  ;;  %v38_v49 = vld [vmem:[%s1632_s0 + $0xc0] sm:$0xff]  ;;  %v39_v51 = vld [vmem:[%s1632_s0 + $0xc8] sm:$0xff] }
  0x12   :  { %941 = vmatprep.mubr.msk.f32.mxu0 %vm86_vm0, %v22_v17  ;;  %989 = vmatprep.mubr.msk.f32.mxu1 %vm86_vm0, %v54_v18  ;;  %v70_v50 = vld [vmem:[%s1632_s0 + $0x1c0] sm:$0xff]  ;;  %v71_v52 = vld [vmem:[%s1632_s0 + $0x1c8] sm:$0xff]  ;;  %v40_v53 = vld [vmem:[%s1632_s0 + $0xd0] sm:$0xff] }
  0x13   :  { %v72_v54 = vld [vmem:[%s1632_s0 + $0x1d0] sm:$0xff]  ;;  %v41_v55 = vld [vmem:[%s1632_s0 + $0xd8] sm:$0xff]  ;;  %v42_v57 = vld [vmem:[%s1632_s0 + $0xe0] sm:$0xff] }
  0x14   :  { %v73_v56 = vld [vmem:[%s1632_s0 + $0x1d8] sm:$0xff]  ;;  %v74_v58 = vld [vmem:[%s1632_s0 + $0x1e0] sm:$0xff]  ;;  %v43_v59 = vld [vmem:[%s1632_s0 + $0xe8] sm:$0xff] }
  0x15   :  { %942 = vmatmul.mubr.msk.f32.gmra.mxu0 %vm86_vm0, %v23_v19  ;;  %990 = vmatmul.mubr.msk.f32.gmra.mxu1 %vm86_vm0, %v55_v20  ;;  %v75_v60 = vld [vmem:[%s1632_s0 + $0x1e8] sm:$0xff]  ;;  %v44_v61 = vld [vmem:[%s1632_s0 + $0xf0] sm:$0xff]  ;;  %v45_v63 = vld [vmem:[%s1632_s0 + $0xf8] sm:$0xff] }
  0x16   :  { %944 = vmatprep.mubr.msk.f32.mxu0 %vm86_vm0, %v24_v21  ;;  %992 = vmatprep.mubr.msk.f32.mxu1 %vm86_vm0, %v56_v22  ;;  %v76_v62 = vld [vmem:[%s1632_s0 + $0x1f0] sm:$0xff]  ;;  %v77_v0 = vld [vmem:[%s1632_s0 + $0x1f8] sm:$0xff]  ;;  %v1309_v1 = vld [vmem:[%s1633_s2] ss:$0 sm:$0xff] }
  0x19   :  { %945 = vmatmul.mubr.msk.f32.gmra.mxu0 %vm86_vm0, %v25_v23  ;;  %993 = vmatmul.mubr.msk.f32.gmra.mxu1 %vm86_vm0, %v57_v24 }
  0x1a   :  { %947 = vmatprep.mubr.msk.f32.mxu0 %vm86_vm0, %v26_v25  ;;  %995 = vmatprep.mubr.msk.f32.mxu1 %vm86_vm0, %v58_v26 }
  0x1d   :  { %948 = vmatmul.mubr.msk.f32.gmra.mxu0 %vm86_vm0, %v27_v27  ;;  %996 = vmatmul.mubr.msk.f32.gmra.mxu1 %vm86_vm0, %v59_v28 }
  0x1e   :  { %950 = vmatprep.mubr.msk.f32.mxu0 %vm86_vm0, %v28_v29  ;;  %998 = vmatprep.mubr.msk.f32.mxu1 %vm86_vm0, %v60_v30 }
  0x21   :  { %951 = vmatmul.mubr.msk.f32.gmra.mxu0 %vm86_vm0, %v29_v31  ;;  %999 = vmatmul.mubr.msk.f32.gmra.mxu1 %vm86_vm0, %v61_v32 }
  0x22   :  { %953 = vmatprep.mubr.msk.f32.mxu0 %vm86_vm0, %v30_v33  ;;  %1001 = vmatprep.mubr.msk.f32.mxu1 %vm86_vm0, %v62_v34 }
  0x25   :  { %954 = vmatmul.mubr.msk.f32.gmra.mxu0 %vm86_vm0, %v31_v35  ;;  %1002 = vmatmul.mubr.msk.f32.gmra.mxu1 %vm86_vm0, %v63_v36 }
  0x26   :  { %956 = vmatprep.mubr.msk.f32.mxu0 %vm86_vm0, %v32_v37  ;;  %1004 = vmatprep.mubr.msk.f32.mxu1 %vm86_vm0, %v64_v38 }
  0x29   :  { %957 = vmatmul.mubr.msk.f32.gmra.mxu0 %vm86_vm0, %v33_v39  ;;  %1005 = vmatmul.mubr.msk.f32.gmra.mxu1 %vm86_vm0, %v65_v40 }
  0x2a   :  { %959 = vmatprep.mubr.msk.f32.mxu0 %vm86_vm0, %v34_v41  ;;  %1007 = vmatprep.mubr.msk.f32.mxu1 %vm86_vm0, %v66_v42 }
  0x2d   :  { %960 = vmatmul.mubr.msk.f32.gmra.mxu0 %vm86_vm0, %v35_v43  ;;  %1008 = vmatmul.mubr.msk.f32.gmra.mxu1 %vm86_vm0, %v67_v44 }
  0x2e   :  { %962 = vmatprep.mubr.msk.f32.mxu0 %vm86_vm0, %v36_v45  ;;  %1010 = vmatprep.mubr.msk.f32.mxu1 %vm86_vm0, %v68_v46 }
  0x31   :  { %963 = vmatmul.mubr.msk.f32.gmra.mxu0 %vm86_vm0, %v37_v47  ;;  %1011 = vmatmul.mubr.msk.f32.gmra.mxu1 %vm86_vm0, %v69_v48 }
  0x32   :  { %965 = vmatprep.mubr.msk.f32.mxu0 %vm86_vm0, %v38_v49  ;;  %1013 = vmatprep.mubr.msk.f32.mxu1 %vm86_vm0, %v70_v50 }
  0x35   :  { %966 = vmatmul.mubr.msk.f32.gmra.mxu0 %vm86_vm0, %v39_v51  ;;  %1014 = vmatmul.mubr.msk.f32.gmra.mxu1 %vm86_vm0, %v71_v52 }
  0x36   :  { %968 = vmatprep.mubr.msk.f32.mxu0 %vm86_vm0, %v40_v53  ;;  %1016 = vmatprep.mubr.msk.f32.mxu1 %vm86_vm0, %v72_v54 }
  0x39   :  { %969 = vmatmul.mubr.msk.f32.gmra.mxu0 %vm86_vm0, %v41_v55  ;;  %1017 = vmatmul.mubr.msk.f32.gmra.mxu1 %vm86_vm0, %v73_v56 }
  0x3a   :  { %971 = vmatprep.mubr.msk.f32.mxu0 %vm86_vm0, %v42_v57  ;;  %1019 = vmatprep.mubr.msk.f32.mxu1 %vm86_vm0, %v74_v58 }
  0x3d   :  { %972 = vmatmul.mubr.msk.f32.gmra.mxu0 %vm86_vm0, %v43_v59  ;;  %1020 = vmatmul.mubr.msk.f32.gmra.mxu1 %vm86_vm0, %v75_v60 }
  0x3e   :  { %974 = vmatprep.mubr.msk.f32.mxu0 %vm86_vm0, %v44_v61  ;;  %1022 = vmatprep.mubr.msk.f32.mxu1 %vm86_vm0, %v76_v62 }
  0x41   :  { %975 = vmatmul.mubr.msk.f32.gmra.mxu0 %vm86_vm0, %v45_v63  ;;  %1023 = vmatmul.mubr.msk.f32.gmra.mxu1 %vm86_vm0, %v77_v0 }
  0xc5   :  { %v931_v2 = vpop.f32.mrf.mxu0  ;;  %v979_v3 = vpop.f32.mrf.mxu1 }
  0xc6   :  { %v351_v4 = vadd.f32 %v931_v2, %v1309_v1  ;;  %v511_v5 = vadd.f32 %v979_v3, %v1309_v1 }
  0xc7   :  { %v345_v6 = vpop.f32.mrf.mxu0  ;;  %v505_v7 = vpop.f32.mrf.mxu1 }
  0xc8   :  { %v665_v8 = vmax.f32 %v351_v4, 0.0  ;;  %v697_v9 = vmax.f32 %v511_v5, 0.0  ;;  %v346_v10 = vadd.f32 %v1309_v1, %v345_v6  ;;  %v506_v11 = vadd.f32 %v1309_v1, %v505_v7 }
  0xc9   :  { %v934_v12 = vpop.f32.mrf.mxu0  ;;  %v982_v13 = vpop.f32.mrf.mxu1 }
  0xca   :  { %730 = vst.msk [vmem:[%s1634_s3 + $0x8] sm:$0xff] %vm728_vm1, %v665_v8  ;;  %762 = vst.msk [vmem:[%s1634_s3 + $0x108] sm:$0xff] %vm728_vm1, %v697_v9  ;;  %v664_v14 = vmax.f32 %v346_v10, 0.0  ;;  %v696_v15 = vmax.f32 %v506_v11, 0.0  ;;  %v361_v16 = vadd.f32 %v934_v12, %v1309_v1  ;;  %v521_v17 = vadd.f32 %v982_v13, %v1309_v1 }
  0xcb   :  { %v355_v18 = vpop.f32.mrf.mxu0  ;;  %v515_v19 = vpop.f32.mrf.mxu1 }
  0xcc   :  { %729 = vst.msk [vmem:[%s1634_s3] sm:$0xff] %vm728_vm1, %v664_v14  ;;  %761 = vst.msk [vmem:[%s1634_s3 + $0x100] sm:$0xff] %vm728_vm1, %v696_v15  ;;  %v667_v20 = vmax.f32 %v361_v16, 0.0  ;;  %v699_v21 = vmax.f32 %v521_v17, 0.0  ;;  %v356_v22 = vadd.f32 %v1309_v1, %v355_v18  ;;  %v516_v23 = vadd.f32 %v1309_v1, %v515_v19 }
  0xcd   :  { %v937_v24 = vpop.f32.mrf.mxu0  ;;  %v985_v25 = vpop.f32.mrf.mxu1 }
  0xce   :  { %732 = vst.msk [vmem:[%s1634_s3 + $0x18] sm:$0xff] %vm728_vm1, %v667_v20  ;;  %764 = vst.msk [vmem:[%s1634_s3 + $0x118] sm:$0xff] %vm728_vm1, %v699_v21  ;;  %v666_v26 = vmax.f32 %v356_v22, 0.0  ;;  %v698_v27 = vmax.f32 %v516_v23, 0.0  ;;  %v371_v28 = vadd.f32 %v937_v24, %v1309_v1  ;;  %v531_v29 = vadd.f32 %v985_v25, %v1309_v1 }
  0xcf   :  { %v365_v30 = vpop.f32.mrf.mxu0  ;;  %v525_v31 = vpop.f32.mrf.mxu1 }
  0xd0   :  { %731 = vst.msk [vmem:[%s1634_s3 + $0x10] sm:$0xff] %vm728_vm1, %v666_v26  ;;  %763 = vst.msk [vmem:[%s1634_s3 + $0x110] sm:$0xff] %vm728_vm1, %v698_v27  ;;  %v669_v32 = vmax.f32 %v371_v28, 0.0  ;;  %v701_v33 = vmax.f32 %v531_v29, 0.0  ;;  %v366_v34 = vadd.f32 %v1309_v1, %v365_v30  ;;  %v526_v35 = vadd.f32 %v1309_v1, %v525_v31 }
  0xd1   :  { %v940_v36 = vpop.f32.mrf.mxu0  ;;  %v988_v37 = vpop.f32.mrf.mxu1 }
  0xd2   :  { %734 = vst.msk [vmem:[%s1634_s3 + $0x28] sm:$0xff] %vm728_vm1, %v669_v32  ;;  %766 = vst.msk [vmem:[%s1634_s3 + $0x128] sm:$0xff] %vm728_vm1, %v701_v33  ;;  %v668_v38 = vmax.f32 %v366_v34, 0.0  ;;  %v700_v39 = vmax.f32 %v526_v35, 0.0  ;;  %v381_v40 = vadd.f32 %v940_v36, %v1309_v1  ;;  %v541_v41 = vadd.f32 %v988_v37, %v1309_v1 }
  0xd3   :  { %v375_v42 = vpop.f32.mrf.mxu0  ;;  %v535_v43 = vpop.f32.mrf.mxu1 }
  0xd4   :  { %733 = vst.msk [vmem:[%s1634_s3 + $0x20] sm:$0xff] %vm728_vm1, %v668_v38  ;;  %765 = vst.msk [vmem:[%s1634_s3 + $0x120] sm:$0xff] %vm728_vm1, %v700_v39  ;;  %v671_v44 = vmax.f32 %v381_v40, 0.0  ;;  %v703_v45 = vmax.f32 %v541_v41, 0.0  ;;  %v376_v46 = vadd.f32 %v1309_v1, %v375_v42  ;;  %v536_v47 = vadd.f32 %v1309_v1, %v535_v43 }
  0xd5   :  { %v943_v48 = vpop.f32.mrf.mxu0  ;;  %v991_v49 = vpop.f32.mrf.mxu1 }
  0xd6   :  { %736 = vst.msk [vmem:[%s1634_s3 + $0x38] sm:$0xff] %vm728_vm1, %v671_v44  ;;  %768 = vst.msk [vmem:[%s1634_s3 + $0x138] sm:$0xff] %vm728_vm1, %v703_v45  ;;  %v670_v50 = vmax.f32 %v376_v46, 0.0  ;;  %v702_v51 = vmax.f32 %v536_v47, 0.0  ;;  %v391_v52 = vadd.f32 %v943_v48, %v1309_v1  ;;  %v551_v53 = vadd.f32 %v991_v49, %v1309_v1 }
  0xd7   :  { %v385_v54 = vpop.f32.mrf.mxu0  ;;  %v545_v55 = vpop.f32.mrf.mxu1 }
  0xd8   :  { %735 = vst.msk [vmem:[%s1634_s3 + $0x30] sm:$0xff] %vm728_vm1, %v670_v50  ;;  %767 = vst.msk [vmem:[%s1634_s3 + $0x130] sm:$0xff] %vm728_vm1, %v702_v51  ;;  %v673_v56 = vmax.f32 %v391_v52, 0.0  ;;  %v705_v57 = vmax.f32 %v551_v53, 0.0  ;;  %v386_v58 = vadd.f32 %v1309_v1, %v385_v54  ;;  %v546_v59 = vadd.f32 %v1309_v1, %v545_v55 }
  0xd9   :  { %v946_v60 = vpop.f32.mrf.mxu0  ;;  %v994_v61 = vpop.f32.mrf.mxu1 }
  0xda   :  { %738 = vst.msk [vmem:[%s1634_s3 + $0x48] sm:$0xff] %vm728_vm1, %v673_v56  ;;  %770 = vst.msk [vmem:[%s1634_s3 + $0x148] sm:$0xff] %vm728_vm1, %v705_v57  ;;  %v672_v62 = vmax.f32 %v386_v58, 0.0  ;;  %v704_v63 = vmax.f32 %v546_v59, 0.0  ;;  %v401_v0 = vadd.f32 %v946_v60, %v1309_v1  ;;  %v561_v2 = vadd.f32 %v994_v61, %v1309_v1 }
  0xdb   :  { %v395_v3 = vpop.f32.mrf.mxu0  ;;  %v555_v4 = vpop.f32.mrf.mxu1 }
  0xdc   :  { %737 = vst.msk [vmem:[%s1634_s3 + $0x40] sm:$0xff] %vm728_vm1, %v672_v62  ;;  %769 = vst.msk [vmem:[%s1634_s3 + $0x140] sm:$0xff] %vm728_vm1, %v704_v63  ;;  %v675_v5 = vmax.f32 %v401_v0, 0.0  ;;  %v707_v6 = vmax.f32 %v561_v2, 0.0  ;;  %v396_v7 = vadd.f32 %v1309_v1, %v395_v3  ;;  %v556_v8 = vadd.f32 %v1309_v1, %v555_v4 }
  0xdd   :  { %v949_v9 = vpop.f32.mrf.mxu0  ;;  %v997_v10 = vpop.f32.mrf.mxu1 }
  0xde   :  { %740 = vst.msk [vmem:[%s1634_s3 + $0x58] sm:$0xff] %vm728_vm1, %v675_v5  ;;  %772 = vst.msk [vmem:[%s1634_s3 + $0x158] sm:$0xff] %vm728_vm1, %v707_v6  ;;  %v674_v11 = vmax.f32 %v396_v7, 0.0  ;;  %v706_v12 = vmax.f32 %v556_v8, 0.0  ;;  %v411_v13 = vadd.f32 %v949_v9, %v1309_v1  ;;  %v571_v14 = vadd.f32 %v997_v10, %v1309_v1 }
  0xdf   :  { %v405_v15 = vpop.f32.mrf.mxu0  ;;  %v565_v16 = vpop.f32.mrf.mxu1 }
  0xe0   :  { %739 = vst.msk [vmem:[%s1634_s3 + $0x50] sm:$0xff] %vm728_vm1, %v674_v11  ;;  %771 = vst.msk [vmem:[%s1634_s3 + $0x150] sm:$0xff] %vm728_vm1, %v706_v12  ;;  %v677_v17 = vmax.f32 %v411_v13, 0.0  ;;  %v709_v18 = vmax.f32 %v571_v14, 0.0  ;;  %v406_v19 = vadd.f32 %v1309_v1, %v405_v15  ;;  %v566_v20 = vadd.f32 %v1309_v1, %v565_v16 }
  0xe1   :  { %v952_v21 = vpop.f32.mrf.mxu0  ;;  %v1000_v22 = vpop.f32.mrf.mxu1 }
  0xe2   :  { %742 = vst.msk [vmem:[%s1634_s3 + $0x68] sm:$0xff] %vm728_vm1, %v677_v17  ;;  %774 = vst.msk [vmem:[%s1634_s3 + $0x168] sm:$0xff] %vm728_vm1, %v709_v18  ;;  %v676_v23 = vmax.f32 %v406_v19, 0.0  ;;  %v708_v24 = vmax.f32 %v566_v20, 0.0  ;;  %v421_v25 = vadd.f32 %v952_v21, %v1309_v1  ;;  %v581_v26 = vadd.f32 %v1000_v22, %v1309_v1 }
  0xe3   :  { %v415_v27 = vpop.f32.mrf.mxu0  ;;  %v575_v28 = vpop.f32.mrf.mxu1 }
  0xe4   :  { %741 = vst.msk [vmem:[%s1634_s3 + $0x60] sm:$0xff] %vm728_vm1, %v676_v23  ;;  %773 = vst.msk [vmem:[%s1634_s3 + $0x160] sm:$0xff] %vm728_vm1, %v708_v24  ;;  %v679_v29 = vmax.f32 %v421_v25, 0.0  ;;  %v711_v30 = vmax.f32 %v581_v26, 0.0  ;;  %v416_v31 = vadd.f32 %v1309_v1, %v415_v27  ;;  %v576_v32 = vadd.f32 %v1309_v1, %v575_v28 }
  0xe5   :  { %v955_v33 = vpop.f32.mrf.mxu0  ;;  %v1003_v34 = vpop.f32.mrf.mxu1 }
  0xe6   :  { %744 = vst.msk [vmem:[%s1634_s3 + $0x78] sm:$0xff] %vm728_vm1, %v679_v29  ;;  %776 = vst.msk [vmem:[%s1634_s3 + $0x178] sm:$0xff] %vm728_vm1, %v711_v30  ;;  %v678_v35 = vmax.f32 %v416_v31, 0.0  ;;  %v710_v36 = vmax.f32 %v576_v32, 0.0  ;;  %v431_v37 = vadd.f32 %v955_v33, %v1309_v1  ;;  %v591_v38 = vadd.f32 %v1003_v34, %v1309_v1 }
  0xe7   :  { %v425_v39 = vpop.f32.mrf.mxu0  ;;  %v585_v40 = vpop.f32.mrf.mxu1 }
  0xe8   :  { %743 = vst.msk [vmem:[%s1634_s3 + $0x70] sm:$0xff] %vm728_vm1, %v678_v35  ;;  %775 = vst.msk [vmem:[%s1634_s3 + $0x170] sm:$0xff] %vm728_vm1, %v710_v36  ;;  %v681_v41 = vmax.f32 %v431_v37, 0.0  ;;  %v713_v42 = vmax.f32 %v591_v38, 0.0  ;;  %v426_v43 = vadd.f32 %v1309_v1, %v425_v39  ;;  %v586_v44 = vadd.f32 %v1309_v1, %v585_v40 }
  0xe9   :  { %v958_v45 = vpop.f32.mrf.mxu0  ;;  %v1006_v46 = vpop.f32.mrf.mxu1 }
  0xea   :  { %746 = vst.msk [vmem:[%s1634_s3 + $0x88] sm:$0xff] %vm728_vm1, %v681_v41  ;;  %778 = vst.msk [vmem:[%s1634_s3 + $0x188] sm:$0xff] %vm728_vm1, %v713_v42  ;;  %v680_v47 = vmax.f32 %v426_v43, 0.0  ;;  %v712_v48 = vmax.f32 %v586_v44, 0.0  ;;  %v441_v49 = vadd.f32 %v958_v45, %v1309_v1  ;;  %v601_v50 = vadd.f32 %v1006_v46, %v1309_v1 }
  0xeb   :  { %v435_v51 = vpop.f32.mrf.mxu0  ;;  %v595_v52 = vpop.f32.mrf.mxu1 }
  0xec   :  { %745 = vst.msk [vmem:[%s1634_s3 + $0x80] sm:$0xff] %vm728_vm1, %v680_v47  ;;  %777 = vst.msk [vmem:[%s1634_s3 + $0x180] sm:$0xff] %vm728_vm1, %v712_v48  ;;  %v683_v53 = vmax.f32 %v441_v49, 0.0  ;;  %v715_v54 = vmax.f32 %v601_v50, 0.0  ;;  %v436_v55 = vadd.f32 %v1309_v1, %v435_v51  ;;  %v596_v56 = vadd.f32 %v1309_v1, %v595_v52 }
  0xed   :  { %v961_v57 = vpop.f32.mrf.mxu0  ;;  %v1009_v58 = vpop.f32.mrf.mxu1 }
  0xee   :  { %748 = vst.msk [vmem:[%s1634_s3 + $0x98] sm:$0xff] %vm728_vm1, %v683_v53  ;;  %780 = vst.msk [vmem:[%s1634_s3 + $0x198] sm:$0xff] %vm728_vm1, %v715_v54  ;;  %v682_v59 = vmax.f32 %v436_v55, 0.0  ;;  %v714_v60 = vmax.f32 %v596_v56, 0.0  ;;  %v451_v61 = vadd.f32 %v961_v57, %v1309_v1  ;;  %v611_v62 = vadd.f32 %v1009_v58, %v1309_v1 }
  0xef   :  { %v445_v63 = vpop.f32.mrf.mxu0  ;;  %v605_v0 = vpop.f32.mrf.mxu1 }
  0xf0   :  { %747 = vst.msk [vmem:[%s1634_s3 + $0x90] sm:$0xff] %vm728_vm1, %v682_v59  ;;  %779 = vst.msk [vmem:[%s1634_s3 + $0x190] sm:$0xff] %vm728_vm1, %v714_v60  ;;  %v685_v2 = vmax.f32 %v451_v61, 0.0  ;;  %v717_v3 = vmax.f32 %v611_v62, 0.0  ;;  %v446_v4 = vadd.f32 %v1309_v1, %v445_v63  ;;  %v606_v5 = vadd.f32 %v1309_v1, %v605_v0 }
  0xf1   :  { %v964_v6 = vpop.f32.mrf.mxu0  ;;  %v1012_v7 = vpop.f32.mrf.mxu1 }
  0xf2   :  { %750 = vst.msk [vmem:[%s1634_s3 + $0xa8] sm:$0xff] %vm728_vm1, %v685_v2  ;;  %782 = vst.msk [vmem:[%s1634_s3 + $0x1a8] sm:$0xff] %vm728_vm1, %v717_v3  ;;  %v684_v8 = vmax.f32 %v446_v4, 0.0  ;;  %v716_v9 = vmax.f32 %v606_v5, 0.0  ;;  %v461_v10 = vadd.f32 %v964_v6, %v1309_v1  ;;  %v621_v11 = vadd.f32 %v1012_v7, %v1309_v1 }
  0xf3   :  { %v455_v12 = vpop.f32.mrf.mxu0  ;;  %v615_v13 = vpop.f32.mrf.mxu1 }
  0xf4   :  { %749 = vst.msk [vmem:[%s1634_s3 + $0xa0] sm:$0xff] %vm728_vm1, %v684_v8  ;;  %781 = vst.msk [vmem:[%s1634_s3 + $0x1a0] sm:$0xff] %vm728_vm1, %v716_v9  ;;  %v687_v14 = vmax.f32 %v461_v10, 0.0  ;;  %v719_v15 = vmax.f32 %v621_v11, 0.0  ;;  %v456_v16 = vadd.f32 %v1309_v1, %v455_v12  ;;  %v616_v17 = vadd.f32 %v1309_v1, %v615_v13 }
  0xf5   :  { %v967_v18 = vpop.f32.mrf.mxu0  ;;  %v1015_v19 = vpop.f32.mrf.mxu1 }
  0xf6   :  { %752 = vst.msk [vmem:[%s1634_s3 + $0xb8] sm:$0xff] %vm728_vm1, %v687_v14  ;;  %784 = vst.msk [vmem:[%s1634_s3 + $0x1b8] sm:$0xff] %vm728_vm1, %v719_v15  ;;  %v686_v20 = vmax.f32 %v456_v16, 0.0  ;;  %v718_v21 = vmax.f32 %v616_v17, 0.0  ;;  %v471_v22 = vadd.f32 %v967_v18, %v1309_v1  ;;  %v631_v23 = vadd.f32 %v1015_v19, %v1309_v1 }
  0xf7   :  { %v465_v24 = vpop.f32.mrf.mxu0  ;;  %v625_v25 = vpop.f32.mrf.mxu1 }
  0xf8   :  { %751 = vst.msk [vmem:[%s1634_s3 + $0xb0] sm:$0xff] %vm728_vm1, %v686_v20  ;;  %783 = vst.msk [vmem:[%s1634_s3 + $0x1b0] sm:$0xff] %vm728_vm1, %v718_v21  ;;  %v689_v26 = vmax.f32 %v471_v22, 0.0  ;;  %v721_v27 = vmax.f32 %v631_v23, 0.0  ;;  %v466_v28 = vadd.f32 %v1309_v1, %v465_v24  ;;  %v626_v29 = vadd.f32 %v1309_v1, %v625_v25 }
  0xf9   :  { %v970_v30 = vpop.f32.mrf.mxu0  ;;  %v1018_v31 = vpop.f32.mrf.mxu1 }
  0xfa   :  { %754 = vst.msk [vmem:[%s1634_s3 + $0xc8] sm:$0xff] %vm728_vm1, %v689_v26  ;;  %786 = vst.msk [vmem:[%s1634_s3 + $0x1c8] sm:$0xff] %vm728_vm1, %v721_v27  ;;  %v688_v32 = vmax.f32 %v466_v28, 0.0  ;;  %v720_v33 = vmax.f32 %v626_v29, 0.0  ;;  %v481_v34 = vadd.f32 %v970_v30, %v1309_v1  ;;  %v641_v35 = vadd.f32 %v1018_v31, %v1309_v1 }
  0xfb   :  { %v475_v36 = vpop.f32.mrf.mxu0  ;;  %v635_v37 = vpop.f32.mrf.mxu1 }
  0xfc   :  { %753 = vst.msk [vmem:[%s1634_s3 + $0xc0] sm:$0xff] %vm728_vm1, %v688_v32  ;;  %785 = vst.msk [vmem:[%s1634_s3 + $0x1c0] sm:$0xff] %vm728_vm1, %v720_v33  ;;  %v691_v38 = vmax.f32 %v481_v34, 0.0  ;;  %v723_v39 = vmax.f32 %v641_v35, 0.0  ;;  %v476_v40 = vadd.f32 %v1309_v1, %v475_v36  ;;  %v636_v41 = vadd.f32 %v1309_v1, %v635_v37 }
  0xfd   :  { %v973_v42 = vpop.f32.mrf.mxu0  ;;  %v1021_v43 = vpop.f32.mrf.mxu1 }
  0xfe   :  { %756 = vst.msk [vmem:[%s1634_s3 + $0xd8] sm:$0xff] %vm728_vm1, %v691_v38  ;;  %788 = vst.msk [vmem:[%s1634_s3 + $0x1d8] sm:$0xff] %vm728_vm1, %v723_v39  ;;  %v690_v44 = vmax.f32 %v476_v40, 0.0  ;;  %v722_v45 = vmax.f32 %v636_v41, 0.0  ;;  %v491_v46 = vadd.f32 %v973_v42, %v1309_v1  ;;  %v651_v47 = vadd.f32 %v1021_v43, %v1309_v1 }
  0xff   :  { %v485_v48 = vpop.f32.mrf.mxu0  ;;  %v645_v49 = vpop.f32.mrf.mxu1 }
 0x100   :  { %755 = vst.msk [vmem:[%s1634_s3 + $0xd0] sm:$0xff] %vm728_vm1, %v690_v44  ;;  %787 = vst.msk [vmem:[%s1634_s3 + $0x1d0] sm:$0xff] %vm728_vm1, %v722_v45  ;;  %v693_v50 = vmax.f32 %v491_v46, 0.0  ;;  %v725_v51 = vmax.f32 %v651_v47, 0.0  ;;  %v486_v52 = vadd.f32 %v1309_v1, %v485_v48  ;;  %v646_v53 = vadd.f32 %v1309_v1, %v645_v49 }
 0x101   :  { %v976_v54 = vpop.f32.mrf.mxu0  ;;  %v1024_v55 = vpop.f32.mrf.mxu1 }
 0x102   :  { %758 = vst.msk [vmem:[%s1634_s3 + $0xe8] sm:$0xff] %vm728_vm1, %v693_v50  ;;  %790 = vst.msk [vmem:[%s1634_s3 + $0x1e8] sm:$0xff] %vm728_vm1, %v725_v51  ;;  %v692_v56 = vmax.f32 %v486_v52, 0.0  ;;  %v724_v57 = vmax.f32 %v646_v53, 0.0  ;;  %v501_v58 = vadd.f32 %v976_v54, %v1309_v1  ;;  %v661_v59 = vadd.f32 %v1024_v55, %v1309_v1 }
 0x103   :  { %v495_v60 = vpop.f32.mrf.mxu0  ;;  %v655_v61 = vpop.f32.mrf.mxu1 }
 0x104   :  { %757 = vst.msk [vmem:[%s1634_s3 + $0xe0] sm:$0xff] %vm728_vm1, %v692_v56  ;;  %789 = vst.msk [vmem:[%s1634_s3 + $0x1e0] sm:$0xff] %vm728_vm1, %v724_v57  ;;  %v695_v62 = vmax.f32 %v501_v58, 0.0  ;;  %v727_v63 = vmax.f32 %v661_v59, 0.0  ;;  %v496_v0 = vadd.f32 %v1309_v1, %v495_v60  ;;  %v656_v2 = vadd.f32 %v1309_v1, %v655_v61 }
 0x106   :  { %760 = vst.msk [vmem:[%s1634_s3 + $0xf8] sm:$0xff] %vm728_vm1, %v695_v62  ;;  %792 = vst.msk [vmem:[%s1634_s3 + $0x1f8] sm:$0xff] %vm728_vm1, %v727_v63  ;;  %v694_v3 = vmax.f32 %v496_v0, 0.0  ;;  %v726_v4 = vmax.f32 %v656_v2, 0.0 }
 0x108   :  { %759 = vst.msk [vmem:[%s1634_s3 + $0xf0] sm:$0xff] %vm728_vm1, %v694_v3  ;;  %791 = vst.msk [vmem:[%s1634_s3 + $0x1f0] sm:$0xff] %vm728_vm1, %v726_v4 }

</bundles_post_ra>
